<compile_context>
chip_gen: v7x
topology: tpu7x:2x2x1
jax: 0.10.0
libtpu: 0.0.40
codegen_flags: <defaults>
</compile_context>

<pallas_src>
import functools

import jax
import jax.numpy as jnp
from jax.experimental import pallas as pl
from jax.experimental.pallas import tpu as pltpu

# Lane-dense padded widths (multiples of 128).
H1_PAD = 512    # hidden 1: 400 -> 512
H2_PAD = 256    # hidden 2: 200 -> 256
OUT_PAD = 128   # output:   dim_action -> 128


def _default_act_dtype():
    # bf16 elementwise (bias + ReLU) halves VALU width and h1/h2 traffic on
    # v6e/v7x; v5-generation VPUs lack native bf16, keep activations f32 there.
    try:
        kind = jax.devices()[0].device_kind.lower()
    except Exception:
        return jnp.float32
    return jnp.bfloat16 if ("v6" in kind or "v7" in kind) else jnp.float32


_ACT_DTYPE = _default_act_dtype()


def actor_kernel(x_ref, w1_ref, b1_ref, w2_ref, b2_ref, w3_ref, b3_ref, o_ref,
                 *, act_dtype):
    # Layer 1: Linear(dim_state, 512) + ReLU. bf16 MXU operands, f32 accumulate.
    # (K=8 here is tiny; deliberately NOT padded to 128 — layer 2 dominates.)
    h1 = jnp.dot(x_ref[...], w1_ref[...], preferred_element_type=jnp.float32)
    h1 = jnp.maximum((h1 + b1_ref[...]).astype(act_dtype), 0)
    # Layer 2: Linear(512, 256) + ReLU.
    h2 = jnp.dot(h1.astype(jnp.bfloat16), w2_ref[...],
                 preferred_element_type=jnp.float32)
    h2 = jnp.maximum((h2 + b2_ref[...]).astype(act_dtype), 0)
    # Layer 3: Linear(256, 128) + tanh. Full 128-lane output => unmasked store.
    h3 = jnp.dot(h2.astype(jnp.bfloat16), w3_ref[...],
                 preferred_element_type=jnp.float32)
    # Output kept f32; switch o_ref dtype to bf16 for bandwidth-bound serving
    # at very large B if downstream tolerates ~3 significant digits.
    o_ref[...] = jnp.tanh(h3 + b3_ref[...]).astype(o_ref.dtype)


def _pad2(a, rows, cols, dtype):
    r, c = a.shape
    return jnp.pad(a.astype(dtype), ((0, rows - r), (0, cols - c)))


def prepare_actor_params(params):
    """One-time pad + downcast of raw f32 params to the kernel's lane-dense
    layout. Call once, keep the result device-resident; `actor_forward` then
    does no per-call weight reshaping/casting. Zero-padding keeps the math
    exact (padded hidden units stay exactly 0 through ReLU; padded weight rows
    contribute 0)."""
    dim_state = params["w1"].shape[0]
    return {
        "w1": _pad2(params["w1"], dim_state, H1_PAD, jnp.bfloat16),
        "b1": _pad2(params["b1"], 1, H1_PAD, jnp.float32),
        "w2": _pad2(params["w2"], H1_PAD, H2_PAD, jnp.bfloat16),
        "b2": _pad2(params["b2"], 1, H2_PAD, jnp.float32),
        "w3": _pad2(params["w3"], H2_PAD, OUT_PAD, jnp.bfloat16),
        "b3": _pad2(params["b3"], 1, OUT_PAD, jnp.float32),
    }


def _choose_tile_b(batch, cap=1024):
    """Batch tile: sublane-multiple, >=2 grid steps for any batch > 8 (lets the
    'parallel' axis shard over v7x's two TensorCores), no power-of-two rounding
    of the batch, padding waste bounded by < cap rows."""
    if batch <= 8:
        return 8
    n_steps = max(2, pl.cdiv(batch, cap))
    tile = pl.cdiv(pl.cdiv(batch, n_steps), 8) * 8
    return min(tile, cap)


@functools.partial(jax.jit, static_argnames=("dim_action",))
def actor_forward(state, prepared, dim_action):
    """state: (B, dim_state) float32.  prepared: output of prepare_actor_params.

    Weights are stored as (in_features, out_features) and biases as
    (1, out_features); x @ W + b is semantically identical to PyTorch's
    x @ W.T + b with W of shape (out, in)."""
    B, dim_state = state.shape
    tile_b = _choose_tile_b(B)
    b_pad = pl.cdiv(B, tile_b) * tile_b
    xp = jnp.pad(state.astype(jnp.bfloat16), ((0, b_pad - B), (0, 0)))

    const = lambda shape: pl.BlockSpec(shape, lambda i: (0, 0))
    kernel = functools.partial(actor_kernel, act_dtype=_ACT_DTYPE)

    out = pl.pallas_call(
        kernel,
        out_shape=jax.ShapeDtypeStruct((b_pad, OUT_PAD), jnp.float32),
        grid=(b_pad // tile_b,),
        in_specs=[
            pl.BlockSpec((tile_b, dim_state), lambda i: (i, 0)),  # x: batch-tiled
            const(prepared["w1"].shape), const(prepared["b1"].shape),  # resident
            const(prepared["w2"].shape), const(prepared["b2"].shape),
            const(prepared["w3"].shape), const(prepared["b3"].shape),
        ],
        out_specs=pl.BlockSpec((tile_b, OUT_PAD), lambda i: (i, 0)),
        compiler_params=pltpu.CompilerParams(
            dimension_semantics=("parallel",)),
    )(xp, prepared["w1"], prepared["b1"], prepared["w2"], prepared["b2"],
      prepared["w3"], prepared["b3"])

    return out[:B, :dim_action]


def init_actor_params(key, dim_state, dim_action):
    """Deterministic init mimicking PyTorch nn.Linear default U(-1/sqrt(fan_in), +)."""
    def linear_init(k, fan_in, fan_out):
        kw, kb = jax.random.split(k)
        bound = 1.0 / jnp.sqrt(float(fan_in))
        w = jax.random.uniform(kw, (fan_in, fan_out), jnp.float32, -bound, bound)
        b = jax.random.uniform(kb, (1, fan_out), jnp.float32, -bound, bound)
        return w, b

    k1, k2, k3 = jax.random.split(key, 3)
    w1, b1 = linear_init(k1, dim_state, 400)
    w2, b2 = linear_init(k2, 400, 200)
    w3, b3 = linear_init(k3, 200, dim_action)
    return {"w1": w1, "b1": b1, "w2": w2, "b2": b2, "w3": w3, "b3": b3}


if __name__ == "__main__":
    # LunarLanderContinuous-v2: dim_state = 8, dim_action = 2
    dim_state, dim_action = 8, 2
    batch = 8

    key = jax.random.PRNGKey(0)
    kp, kx = jax.random.split(key)
    params = init_actor_params(kp, dim_state, dim_action)
    state = jax.random.normal(kx, (batch, dim_state), dtype=jnp.float32)

    # One-time param prep (pad + bf16 cast), kept device-resident.
    prepared = jax.tree_util.tree_map(jax.block_until_ready,
                                      prepare_actor_params(params))

    out = jax.block_until_ready(actor_forward(state, prepared, dim_action))

    # Pure-f32 JAX reference; kernel uses bf16 MXU operands / activations with
    # f32 accumulation, so tolerance is relaxed accordingly.
    h1 = jnp.maximum(state @ params["w1"] + params["b1"], 0.0)
    h2 = jnp.maximum(h1 @ params["w2"] + params["b2"], 0.0)
    ref = jnp.tanh(h2 @ params["w3"] + params["b3"])

    assert out.shape == (batch, dim_action)
    assert jnp.allclose(out, ref, atol=5e-2, rtol=5e-2), \
        f"max abs err {jnp.max(jnp.abs(out - ref))}"

    print("KERNEL_OK")
</pallas_src>

<mosaic_0001>
module attributes {stable_mosaic.version = 11 : i64} {
  func.func @actor_kernel(%arg0: i32, %arg1: memref<8x8xbf16, #tpu.memory_space<vmem>>, %arg2: memref<8x512xbf16, #tpu.memory_space<vmem>>, %arg3: memref<1x512xf32, #tpu.memory_space<vmem>>, %arg4: memref<512x256xbf16, #tpu.memory_space<vmem>>, %arg5: memref<1x256xf32, #tpu.memory_space<vmem>>, %arg6: memref<256x128xbf16, #tpu.memory_space<vmem>>, %arg7: memref<1x128xf32, #tpu.memory_space<vmem>>, %arg8: memref<8x128xf32, #tpu.memory_space<vmem>>) attributes {dimension_semantics = [#tpu.dimension_semantics<parallel>], iteration_bounds = array<i64: 1>, scalar_prefetch = 0 : i64, scratch_operands = 0 : i64, tpu.core_type = #tpu.core_type<tc>, window_params = [{transform_indices = @transform_0, window_bounds = array<i64: 8, 8>}, {pipeline_mode = #tpu.pipeline_mode<synchronous>, transform_indices = @transform_1, window_bounds = array<i64: 8, 512>}, {pipeline_mode = #tpu.pipeline_mode<synchronous>, transform_indices = @transform_2, window_bounds = array<i64: 1, 512>}, {pipeline_mode = #tpu.pipeline_mode<synchronous>, transform_indices = @transform_3, window_bounds = array<i64: 512, 256>}, {pipeline_mode = #tpu.pipeline_mode<synchronous>, transform_indices = @transform_4, window_bounds = array<i64: 1, 256>}, {pipeline_mode = #tpu.pipeline_mode<synchronous>, transform_indices = @transform_5, window_bounds = array<i64: 256, 128>}, {pipeline_mode = #tpu.pipeline_mode<synchronous>, transform_indices = @transform_6, window_bounds = array<i64: 1, 128>}, {transform_indices = @transform_7, window_bounds = array<i64: 8, 128>}]} {
    %c0 = arith.constant 0 : index
    %c0_0 = arith.constant 0 : index
    %0 = vector.load %arg1[%c0, %c0_0] : memref<8x8xbf16, #tpu.memory_space<vmem>>, vector<8x8xbf16>
    %c0_1 = arith.constant 0 : index
    %c0_2 = arith.constant 0 : index
    %1 = vector.load %arg2[%c0_1, %c0_2] : memref<8x512xbf16, #tpu.memory_space<vmem>>, vector<8x512xbf16>
    %cst = arith.constant dense<0.000000e+00> : vector<8x512xf32>
    %2 = tpu.matmul %0, %1, %cst {dimension_numbers = #tpu.dot_dimension_numbers<[1], [0], [0], [1], [0, 0, 1, 1], [], []>} : vector<8x8xbf16>, vector<8x512xbf16>, vector<8x512xf32> -> vector<8x512xf32>
    %c0_3 = arith.constant 0 : index
    %c0_4 = arith.constant 0 : index
    %3 = vector.load %arg3[%c0_3, %c0_4] : memref<1x512xf32, #tpu.memory_space<vmem>>, vector<1x512xf32>
    %4 = vector.broadcast %3 : vector<1x512xf32> to vector<8x512xf32>
    %5 = arith.addf %2, %4 : vector<8x512xf32>
    %cst_5 = arith.constant 0.000000e+00 : f32
    %6 = vector.broadcast %cst_5 : f32 to vector<8x512xf32>
    %7 = arith.maximumf %5, %6 : vector<8x512xf32>
    %8 = arith.truncf %7 : vector<8x512xf32> to vector<8x512xbf16>
    %c0_6 = arith.constant 0 : index
    %c0_7 = arith.constant 0 : index
    %9 = vector.load %arg4[%c0_6, %c0_7] : memref<512x256xbf16, #tpu.memory_space<vmem>>, vector<512x256xbf16>
    %cst_8 = arith.constant dense<0.000000e+00> : vector<8x256xf32>
    %10 = tpu.matmul %8, %9, %cst_8 {dimension_numbers = #tpu.dot_dimension_numbers<[1], [0], [0], [1], [0, 0, 1, 1], [], []>} : vector<8x512xbf16>, vector<512x256xbf16>, vector<8x256xf32> -> vector<8x256xf32>
    %c0_9 = arith.constant 0 : index
    %c0_10 = arith.constant 0 : index
    %11 = vector.load %arg5[%c0_9, %c0_10] : memref<1x256xf32, #tpu.memory_space<vmem>>, vector<1x256xf32>
    %12 = vector.broadcast %11 : vector<1x256xf32> to vector<8x256xf32>
    %13 = arith.addf %10, %12 : vector<8x256xf32>
    %cst_11 = arith.constant 0.000000e+00 : f32
    %14 = vector.broadcast %cst_11 : f32 to vector<8x256xf32>
    %15 = arith.maximumf %13, %14 : vector<8x256xf32>
    %16 = arith.truncf %15 : vector<8x256xf32> to vector<8x256xbf16>
    %c0_12 = arith.constant 0 : index
    %c0_13 = arith.constant 0 : index
    %17 = vector.load %arg6[%c0_12, %c0_13] : memref<256x128xbf16, #tpu.memory_space<vmem>>, vector<256x128xbf16>
    %cst_14 = arith.constant dense<0.000000e+00> : vector<8x128xf32>
    %18 = tpu.matmul %16, %17, %cst_14 {dimension_numbers = #tpu.dot_dimension_numbers<[1], [0], [0], [1], [0, 0, 1, 1], [], []>} : vector<8x256xbf16>, vector<256x128xbf16>, vector<8x128xf32> -> vector<8x128xf32>
    %c0_15 = arith.constant 0 : index
    %c0_16 = arith.constant 0 : index
    %19 = vector.load %arg7[%c0_15, %c0_16] : memref<1x128xf32, #tpu.memory_space<vmem>>, vector<1x128xf32>
    %20 = vector.broadcast %19 : vector<1x128xf32> to vector<8x128xf32>
    %21 = arith.addf %18, %20 : vector<8x128xf32>
    %22 = math.tanh %21 : vector<8x128xf32>
    %c0_17 = arith.constant 0 : index
    %c0_18 = arith.constant 0 : index
    %23 = vector.load %arg8[%c0_17, %c0_18] : memref<8x128xf32, #tpu.memory_space<vmem>>, vector<8x128xf32>
    tpu.vector_store %arg8[%c0_17, %c0_18], %22 {strides = array<i32>} : memref<8x128xf32, #tpu.memory_space<vmem>>, vector<8x128xf32>,
    return
  }
  func.func @transform_0(%arg0: i32) -> (i32, i32) {
    %c0_i32 = arith.constant 0 : i32
    %c0_i32_0 = arith.constant 0 : i32
    return %arg0, %c0_i32 : i32, i32
  }
  func.func @transform_1(%arg0: i32) -> (i32, i32) {
    %c0_i32 = arith.constant 0 : i32
    %c0_i32_0 = arith.constant 0 : i32
    %c0_i32_1 = arith.constant 0 : i32
    return %c0_i32, %c0_i32_0 : i32, i32
  }
  func.func @transform_2(%arg0: i32) -> (i32, i32) {
    %c0_i32 = arith.constant 0 : i32
    %c0_i32_0 = arith.constant 0 : i32
    %c0_i32_1 = arith.constant 0 : i32
    return %c0_i32, %c0_i32_0 : i32, i32
  }
  func.func @transform_3(%arg0: i32) -> (i32, i32) {
    %c0_i32 = arith.constant 0 : i32
    %c0_i32_0 = arith.constant 0 : i32
    %c0_i32_1 = arith.constant 0 : i32
    return %c0_i32, %c0_i32_0 : i32, i32
  }
  func.func @transform_4(%arg0: i32) -> (i32, i32) {
    %c0_i32 = arith.constant 0 : i32
    %c0_i32_0 = arith.constant 0 : i32
    %c0_i32_1 = arith.constant 0 : i32
    return %c0_i32, %c0_i32_0 : i32, i32
  }
  func.func @transform_5(%arg0: i32) -> (i32, i32) {
    %c0_i32 = arith.constant 0 : i32
    %c0_i32_0 = arith.constant 0 : i32
    %c0_i32_1 = arith.constant 0 : i32
    return %c0_i32, %c0_i32_0 : i32, i32
  }
  func.func @transform_6(%arg0: i32) -> (i32, i32) {
    %c0_i32 = arith.constant 0 : i32
    %c0_i32_0 = arith.constant 0 : i32
    %c0_i32_1 = arith.constant 0 : i32
    return %c0_i32, %c0_i32_0 : i32, i32
  }
  func.func @transform_7(%arg0: i32) -> (i32, i32) {
    %c0_i32 = arith.constant 0 : i32
    %c0_i32_0 = arith.constant 0 : i32
    return %arg0, %c0_i32 : i32, i32
  }
}

</mosaic_0001>

<bundles_post_ra>
// kernel: actor_forward.1
= control target key start
LH: loop header
LB: loop body
LE: loop exit
PB: predicated region body
PF: predicated region fallthrough
CT: control target
= control target key end

     0   :  { %12 = vsyncpa [#allocation3], 0  ;;  %s1262_s0 = inlined_call_operand.vmem [shape: bf16[8,8], index: 0, kind: input, shape index: {}]   ;;  %s1263_s1 = inlined_call_operand.vmem [shape: bf16[8,512], index: 1, kind: input, shape index: {}]   ;;  %s1264_s2 = inlined_call_operand.vmem [shape: f32[1,512], index: 2, kind: input, shape index: {}]   ;;  %s1265_s3 = inlined_call_operand.hbm [shape: bf16[512,256], index: 3, kind: input, shape index: {}]   ;;  %s1266_s4 = inlined_call_operand.vmem [shape: f32[1,256], index: 4, kind: input, shape index: {}]   ;;  %s1267_s5 = inlined_call_operand.hbm [shape: bf16[256,128], index: 5, kind: input, shape index: {}]   ;;  %s1268_s6 = inlined_call_operand.vmem [shape: f32[1,128], index: 6, kind: input, shape index: {}]   ;;  %s1269_s7 = inlined_call_operand.vmem [shape: f32[8,128], index: 7, kind: output, shape index: {}]  }
   0x1   :  { %13 = vsyncpa [#allocation5], 0  ;;  %s1150_s24 = smov [#allocation2]   ;;  %s1102_s28 = scalar_lea.hbm %s1265_s3, 8192 }
   0x2   :  { %s25_s25 = sshll.u32 %s1150_s24, 4  ;;  %p1103_p0 = scmp.ne.s32.totalorder %s1265_s3, %s1102_s28  ;;  %s26_s25 = int_to_ptr.vmem [resolvable:$true] %s25_s25 }
   0x3   :  { %p1106_p1 = scmp.lt.u32.totalorder %s1102_s28, %s1265_s3 }
   0x5   :  { %p1108_p2 = pnand %p1106_p1, %p1103_p0 }
   0x7   :  { %1111 = shalt.err (!%p1108_p2)
}
   0x8   :  { %s1112_s10 = scalar_lea.vmem %s26_s25, 8192  ;;  %p1117_p4 = scmp.lt.s32.totalorder %s26_s25, %s26_s25 }
   0x9   :  { %p1113_p3 = scmp.ne.s32.totalorder %s26_s25, %s1112_s10  ;;  %p1118_p5 = scmp.lt.s32.totalorder %s1112_s10, %s1112_s10 }
   0xb   :  { %p1119_p6 = por %p1118_p5, %p1117_p4 }
   0xd   :  { %p1120_p7 = pnand %p1119_p6, %p1113_p3 }
   0xf   :  { %1123 = shalt.err (!%p1120_p7)
}
  0x10   :  { %s1151_s11 = smov 128   ;;  %s1152_s12 = smov 8  }
  0x11   :  { %31 = dma.hbm_to_vmem [thread:$0]  %s1265_s3, 8192, %s26_s25, [#allocation3], %s1151_s11, %s1151_s11, %s1152_s12  }
  0x12   :  { %s1153_s15 = smov [#allocation4]   ;;  %s1124_s19 = scalar_lea.hbm %s1267_s5, 2048 }
  0x13   :  { %s39_s16 = sshll.u32 %s1153_s15, 4  ;;  %p1125_p8 = scmp.ne.s32.totalorder %s1267_s5, %s1124_s19  ;;  %s40_s16 = int_to_ptr.vmem [resolvable:$true] %s39_s16 }
  0x14   :  { %p1128_p9 = scmp.lt.u32.totalorder %s1124_s19, %s1267_s5 }
  0x16   :  { %p1130_p10 = pnand %p1128_p9, %p1125_p8 }
  0x18   :  { %1133 = shalt.err (!%p1130_p10)
}
  0x19   :  { %s1134_s24 = scalar_lea.vmem %s40_s16, 2048  ;;  %p1139_p12 = scmp.lt.s32.totalorder %s40_s16, %s40_s16 }
  0x1a   :  { %p1135_p11 = scmp.ne.s32.totalorder %s40_s16, %s1134_s24  ;;  %p1140_p13 = scmp.lt.s32.totalorder %s1134_s24, %s1134_s24 }
  0x1c   :  { %p1141_p0 = por %p1140_p13, %p1139_p12 }
  0x1e   :  { %p1142_p1 = pnand %p1141_p0, %p1135_p11 }
  0x20   :  { %1145 = shalt.err (!%p1142_p1)
}
  0x21   :  { %s1154_s3 = smov 64   ;;  %s1155_s25 = smov 4  }
  0x22   :  { %45 = dma.hbm_to_vmem [thread:$0]  %s1267_s5, 2048, %s40_s16, [#allocation5], %s1154_s3, %s1154_s3, %s1155_s25  }
  0x23   :  { %1146 = dma.done.wait [#allocation3], 8192  }
  0x24   :  { %1147 = vsyncadd [#allocation3], 4294959104 }
  0x25   :  { %1148 = dma.done.wait [#allocation5], 2048  }
  0x26   :  { %1149 = vsyncadd [#allocation5], 4294965248  ;;  %v1156_v0 = vmov 0   ;;  %v56_v1 = vld [vmem:[%s1263_s1] sm:$0xff]  ;;  %vm94_vm0 = vcmask 1043456   ;;  %v57_v2 = vld [vmem:[%s1263_s1 + $0x8] sm:$0xff] }
  0x27   :  { %139 = vmatprep.mubr.bf16.mxu0 %v1156_v0  ;;  %v863_v3 = vcombine.high %v56_v1, %v56_v1  ;;  %v862_v4 = vcombine.low %v56_v1, %v56_v1  ;;  %v865_v5 = vcombine.high %v57_v2, %v57_v2  ;;  %v864_v6 = vcombine.low %v57_v2, %v57_v2  ;;  %v988_v7 = vld [vmem:[#allocation2 + $0x4] ss:$8 sps:$4 sm:$0xff]   ;;  %v990_v8 = vld [vmem:[#allocation2] ss:$8 sps:$4 sm:$0xff]   ;;  %v991_v10 = vld [vmem:[#allocation2 + $0x14] ss:$8 sps:$4 sm:$0xff]  }
  0x28   :  { %593 = vmatprep.subr.bf16.mxu1 %v988_v7  ;;  %v55_v11 = vld [vmem:[%s1262_s0] sm:$0xf]  ;;  %vm90_vm1 = vcmask 64512   ;;  %v994_v14 = vld [vmem:[#allocation2 + $0x24] ss:$8 sps:$4 sm:$0xff]  }
  0x29   :  { %866 = vmatprep.subr.msk.bf16.mxu0 %vm94_vm0, %v863_v3  ;;  %v96_v9 = vsel %vm94_vm0, %v862_v4, 0  ;;  %594 = vmatpush1.bf16.msra.mxu1 %v990_v8  ;;  %v102_v12 = vsel %vm94_vm0, %v864_v6, 0  ;;  %v993_v13 = vld [vmem:[#allocation2 + $0x10] ss:$8 sps:$4 sm:$0xff]   ;;  %v998_v15 = vld [vmem:[#allocation2 + $0x104] ss:$8 sps:$4 sm:$0xff]  }
  0x2a   :  { %108 = vmatpush1.bf16.msra.mxu0 %v96_v9  ;;  %595 = vmatprep.subr.bf16.mxu1 %v991_v10  ;;  %v999_v16 = vld [vmem:[#allocation2 + $0x20] ss:$8 sps:$4 sm:$0xff]   ;;  %v1000_v17 = vld [vmem:[#allocation2 + $0x34] ss:$8 sps:$4 sm:$0xff]   ;;  %v1005_v20 = vld [vmem:[#allocation2 + $0x30] ss:$8 sps:$4 sm:$0xff]  }
  0x2b   :  { %868 = vmatprep.subr.msk.bf16.mxu0 %vm94_vm0, %v865_v5  ;;  %v996_v18 = vld [vmem:[#allocation2 + $0x100] ss:$8 sps:$4 sm:$0xff]   ;;  %v1004_v19 = vld [vmem:[#allocation2 + $0x114] ss:$8 sps:$4 sm:$0xff]   ;;  %v1006_v21 = vld [vmem:[#allocation2 + $0x44] ss:$8 sps:$4 sm:$0xff]  }
  0x2c   :  { %v1002_v22 = vld [vmem:[#allocation2 + $0x110] ss:$8 sps:$4 sm:$0xff]   ;;  %v1010_v23 = vld [vmem:[#allocation2 + $0x124] ss:$8 sps:$4 sm:$0xff]   ;;  %v1011_v24 = vld [vmem:[#allocation2 + $0x40] ss:$8 sps:$4 sm:$0xff]  }
  0x2d   :  { %867 = vmatmul.mubr.msk.bf16.vlgmr.msra.gmra.mrb[0].mxu0 %vm90_vm1, %v55_v11  ;;  %596 = vmatpush1.bf16.msra.mxu1 %v993_v13  ;;  %v1012_v25 = vld [vmem:[#allocation2 + $0x54] ss:$8 sps:$4 sm:$0xff]   ;;  %v1008_v26 = vld [vmem:[#allocation2 + $0x120] ss:$8 sps:$4 sm:$0xff]   ;;  %v1017_v28 = vld [vmem:[#allocation2 + $0x50] ss:$8 sps:$4 sm:$0xff]  }
  0x2e   :  { %149 = vmatpush1.bf16.msra.mxu0 %v102_v12  ;;  %180 = vmatprep.mubr.bf16.mxu0 %v1156_v0  ;;  %v1016_v27 = vld [vmem:[#allocation2 + $0x134] ss:$8 sps:$4 sm:$0xff]   ;;  %v1018_v29 = vld [vmem:[#allocation2 + $0x64] ss:$8 sps:$4 sm:$0xff]   ;;  %v1014_v30 = vld [vmem:[#allocation2 + $0x130] ss:$8 sps:$4 sm:$0xff]  }
  0x2f   :  { %634 = vmatprep.subr.bf16.mxu0 %v998_v15  ;;  %597 = vmatprep.subr.bf16.mxu1 %v994_v14  ;;  %v1022_v31 = vld [vmem:[#allocation2 + $0x144] ss:$8 sps:$4 sm:$0xff]   ;;  %v1023_v32 = vld [vmem:[#allocation2 + $0x60] ss:$8 sps:$4 sm:$0xff]   ;;  %v1024_v33 = vld [vmem:[#allocation2 + $0x74] ss:$8 sps:$4 sm:$0xff]  }
  0x30   :  { %v1020_v34 = vld [vmem:[#allocation2 + $0x140] ss:$8 sps:$4 sm:$0xff]   ;;  %v1028_v35 = vld [vmem:[#allocation2 + $0x154] ss:$8 sps:$4 sm:$0xff]   ;;  %v1029_v36 = vld [vmem:[#allocation2 + $0x70] ss:$8 sps:$4 sm:$0xff]  }
  0x31   :  { %598 = vmatpush1.bf16.msra.mxu1 %v999_v16  ;;  %v1030_v37 = vld [vmem:[#allocation2 + $0x84] ss:$8 sps:$4 sm:$0xff]   ;;  %v1026_v38 = vld [vmem:[#allocation2 + $0x150] ss:$8 sps:$4 sm:$0xff]   ;;  %v1035_v40 = vld [vmem:[#allocation2 + $0x80] ss:$8 sps:$4 sm:$0xff]  }
  0x32   :  { %599 = vmatprep.subr.bf16.mxu1 %v1000_v17  ;;  %v1034_v39 = vld [vmem:[#allocation2 + $0x164] ss:$8 sps:$4 sm:$0xff]   ;;  %v1036_v41 = vld [vmem:[#allocation2 + $0x94] ss:$8 sps:$4 sm:$0xff]   ;;  %v1032_v42 = vld [vmem:[#allocation2 + $0x160] ss:$8 sps:$4 sm:$0xff]  }
  0x33   :  { %v1040_v43 = vld [vmem:[#allocation2 + $0x174] ss:$8 sps:$4 sm:$0xff]   ;;  %v1041_v44 = vld [vmem:[#allocation2 + $0x90] ss:$8 sps:$4 sm:$0xff]   ;;  %v1042_v45 = vld [vmem:[#allocation2 + $0xa4] ss:$8 sps:$4 sm:$0xff]  }
  0x34   :  { %v1038_v46 = vld [vmem:[#allocation2 + $0x170] ss:$8 sps:$4 sm:$0xff]   ;;  %v1046_v47 = vld [vmem:[#allocation2 + $0x184] ss:$8 sps:$4 sm:$0xff]   ;;  %v1047_v48 = vld [vmem:[#allocation2 + $0xa0] ss:$8 sps:$4 sm:$0xff]  }
  0x35   :  { %869 = vmatmul.mubr.msk.bf16.vlgmr.msra.gmra.mrb[4].mxu0 %vm90_vm1, %v55_v11  ;;  %600 = vmatpush1.bf16.msra.mxu1 %v1005_v20  ;;  %v1048_v49 = vld [vmem:[#allocation2 + $0xb4] ss:$8 sps:$4 sm:$0xff]   ;;  %v1044_v50 = vld [vmem:[#allocation2 + $0x180] ss:$8 sps:$4 sm:$0xff]   ;;  %v1053_v52 = vld [vmem:[#allocation2 + $0xb0] ss:$8 sps:$4 sm:$0xff]   ;;  %v60_v11 = vlaneseq }
  0x36   :  { %635 = vmatpush1.bf16.msra.mxu0 %v996_v18  ;;  %601 = vmatprep.subr.bf16.mxu1 %v1006_v21  ;;  %v1052_v51 = vld [vmem:[#allocation2 + $0x194] ss:$8 sps:$4 sm:$0xff]   ;;  %v1054_v53 = vld [vmem:[#allocation2 + $0xc4] ss:$8 sps:$4 sm:$0xff]   ;;  %v1050_v54 = vld [vmem:[#allocation2 + $0x190] ss:$8 sps:$4 sm:$0xff]  }
  0x37   :  { %636 = vmatprep.subr.bf16.mxu0 %v1004_v19  ;;  %v1058_v55 = vld [vmem:[#allocation2 + $0x1a4] ss:$8 sps:$4 sm:$0xff]   ;;  %v1059_v56 = vld [vmem:[#allocation2 + $0xc0] ss:$8 sps:$4 sm:$0xff]   ;;  %v1060_v57 = vld [vmem:[#allocation2 + $0xd4] ss:$8 sps:$4 sm:$0xff]  }
  0x38   :  { %v1056_v58 = vld [vmem:[#allocation2 + $0x1a0] ss:$8 sps:$4 sm:$0xff]   ;;  %v1064_v59 = vld [vmem:[#allocation2 + $0x1b4] ss:$8 sps:$4 sm:$0xff]   ;;  %v1065_v60 = vld [vmem:[#allocation2 + $0xd0] ss:$8 sps:$4 sm:$0xff]  }
  0x39   :  { %602 = vmatpush1.bf16.msra.mxu1 %v1011_v24  ;;  %v1062_v61 = vld [vmem:[#allocation2 + $0x1b0] ss:$8 sps:$4 sm:$0xff]   ;;  %v1066_v62 = vld [vmem:[#allocation2 + $0xe4] ss:$8 sps:$4 sm:$0xff]   ;;  %v1068_v0 = vld [vmem:[#allocation2 + $0x1c0] ss:$8 sps:$4 sm:$0xff]  }
  0x3a   :  { %637 = vmatpush1.bf16.msra.mxu0 %v1002_v22  ;;  %603 = vmatprep.subr.bf16.mxu1 %v1012_v25  ;;  %v1070_v63 = vld [vmem:[#allocation2 + $0x1c4] ss:$8 sps:$4 sm:$0xff]   ;;  %v1071_v1 = vld [vmem:[#allocation2 + $0xe0] ss:$8 sps:$4 sm:$0xff]   ;;  %v1072_v2 = vld [vmem:[#allocation2 + $0xf4] ss:$8 sps:$4 sm:$0xff]  }
  0x3b   :  { %638 = vmatprep.subr.bf16.mxu0 %v1010_v23  ;;  %v1076_v3 = vld [vmem:[#allocation2 + $0x1d4] ss:$8 sps:$4 sm:$0xff]   ;;  %v1074_v4 = vld [vmem:[#allocation2 + $0x1d0] ss:$8 sps:$4 sm:$0xff]   ;;  %v1080_v6 = vld [vmem:[#allocation2 + $0x1e4] ss:$8 sps:$4 sm:$0xff]  }
  0x3c   :  { %v1077_v5 = vld [vmem:[#allocation2 + $0xf0] ss:$8 sps:$4 sm:$0xff]   ;;  %v1078_v7 = vld [vmem:[#allocation2 + $0x1e0] ss:$8 sps:$4 sm:$0xff]   ;;  %v1083_v8 = vld [vmem:[#allocation2 + $0x1f4] ss:$8 sps:$4 sm:$0xff]  }
  0x3d   :  { %604 = vmatpush1.bf16.msra.mxu1 %v1017_v28  ;;  %v1081_v9 = vld [vmem:[#allocation2 + $0x1f0] ss:$8 sps:$4 sm:$0xff]   ;;  %v1084_v10 = vld [vmem:[#allocation4 + $0x40] sm:$0xff]   ;;  %v1236_v12 = vshrl.u32 %v60_v11, 7 }
  0x3e   :  { %639 = vmatpush1.bf16.msra.mxu0 %v1008_v26  ;;  %605 = vmatprep.subr.bf16.mxu1 %v1018_v29  ;;  %v58_v14 = vld [vmem:[%s1264_s2] sm:$0xf] }
  0x3f   :  { %640 = vmatprep.subr.bf16.mxu0 %v1016_v27  ;;  %v62_v13 = vsub.s32 0, %v1236_v12  ;;  %v66_v15 = vsub.s32 1, %v1236_v12  ;;  %v70_v21 = vsub.s32 2, %v1236_v12  ;;  %v74_v24 = vsub.s32 3, %v1236_v12  ;;  %v934_v12 = vld [vmem:[%s1268_s6] ss:$0 sm:$0xff] }
  0x41   :  { %606 = vmatpush1.bf16.msra.mxu1 %v1023_v32  ;;  %v63_v16 = vrot.slane %v58_v14, %v62_v13  ;;  %v67_v17 = vrot.slane %v58_v14, %v66_v15  ;;  %v71_v28 = vrot.slane %v58_v14, %v70_v21 }
  0x42   :  { %641 = vmatpush1.bf16.msra.mxu0 %v1014_v30  ;;  %607 = vmatprep.subr.bf16.mxu1 %v1024_v33  ;;  %v75_v30 = vrot.slane %v58_v14, %v74_v24  ;;  %v1086_v33 = vld [vmem:[#allocation4 + $0x48] sm:$0xff]  }
  0x43   :  { %642 = vmatprep.subr.bf16.mxu0 %v1022_v31  ;;  %v1085_v31 = vld [vmem:[#allocation4] sm:$0xff]  }
  0x45   :  { %608 = vmatpush1.bf16.msra.mxu1 %v1029_v36 }
  0x46   :  { %643 = vmatpush1.bf16.msra.mxu0 %v1020_v34  ;;  %609 = vmatprep.subr.bf16.mxu1 %v1030_v37 }
  0x47   :  { %644 = vmatprep.subr.bf16.mxu0 %v1028_v35 }
  0x49   :  { %610 = vmatpush1.bf16.msra.mxu1 %v1035_v40 }
  0x4a   :  { %645 = vmatpush1.bf16.msra.mxu0 %v1026_v38  ;;  %611 = vmatprep.subr.bf16.mxu1 %v1036_v41 }
  0x4b   :  { %646 = vmatprep.subr.bf16.mxu0 %v1034_v39  ;;  %v1087_v39 = vld [vmem:[#allocation4 + $0x8] sm:$0xff]  }
  0x4d   :  { %612 = vmatpush1.bf16.msra.mxu1 %v1041_v44 }
  0x4e   :  { %647 = vmatpush1.bf16.msra.mxu0 %v1032_v42  ;;  %613 = vmatprep.subr.bf16.mxu1 %v1042_v45  ;;  %v1088_v42 = vld [vmem:[#allocation4 + $0x50] sm:$0xff]  }
  0x4f   :  { %648 = vmatprep.subr.bf16.mxu0 %v1040_v43  ;;  %v1089_v45 = vld [vmem:[#allocation4 + $0x10] sm:$0xff]  }
  0x51   :  { %614 = vmatpush1.bf16.msra.mxu1 %v1047_v48  ;;  %v1091_v48 = vld [vmem:[#allocation4 + $0x18] sm:$0xff]  }
  0x52   :  { %649 = vmatpush1.bf16.msra.mxu0 %v1038_v46  ;;  %615 = vmatprep.subr.bf16.mxu1 %v1048_v49  ;;  %v1092_v49 = vld [vmem:[#allocation4 + $0x60] sm:$0xff]  }
  0x53   :  { %650 = vmatprep.subr.bf16.mxu0 %v1046_v47  ;;  %v1090_v47 = vld [vmem:[#allocation4 + $0x58] sm:$0xff]  }
  0x55   :  { %616 = vmatpush1.bf16.msra.mxu1 %v1053_v52  ;;  %v1095_v52 = vld [vmem:[#allocation4 + $0x28] sm:$0xff]  }
  0x56   :  { %651 = vmatpush1.bf16.msra.mxu0 %v1044_v50  ;;  %617 = vmatprep.subr.bf16.mxu1 %v1054_v53  ;;  %v1093_v50 = vld [vmem:[#allocation4 + $0x20] sm:$0xff]   ;;  %v1096_v53 = vld [vmem:[#allocation4 + $0x70] sm:$0xff]  }
  0x57   :  { %652 = vmatprep.subr.bf16.mxu0 %v1052_v51  ;;  %v1094_v51 = vld [vmem:[#allocation4 + $0x68] sm:$0xff]  }
  0x59   :  { %618 = vmatpush1.bf16.msra.mxu1 %v1059_v56  ;;  %v1099_v56 = vld [vmem:[#allocation4 + $0x38] sm:$0xff]  }
  0x5a   :  { %653 = vmatpush1.bf16.msra.mxu0 %v1050_v54  ;;  %619 = vmatprep.subr.bf16.mxu1 %v1060_v57  ;;  %v1097_v54 = vld [vmem:[#allocation4 + $0x30] sm:$0xff]  }
  0x5b   :  { %654 = vmatprep.subr.bf16.mxu0 %v1058_v55  ;;  %v1098_v55 = vld [vmem:[#allocation4 + $0x78] sm:$0xff]   ;;  %v261_v57 = vld [vmem:[%s1266_s4] sm:$0x3] }
  0x5d   :  { %620 = vmatpush1.bf16.msra.mxu1 %v1065_v60 }
  0x5e   :  { %655 = vmatpush1.bf16.msra.mxu0 %v1056_v58  ;;  %621 = vmatprep.subr.bf16.mxu1 %v1066_v62 }
  0x5f   :  { %656 = vmatprep.subr.bf16.mxu0 %v1064_v59 }
  0x61   :  { %622 = vmatpush1.bf16.msra.mxu1 %v1071_v1 }
  0x62   :  { %657 = vmatpush1.bf16.msra.mxu0 %v1062_v61  ;;  %623 = vmatprep.subr.bf16.mxu1 %v1072_v2  ;;  %v266_v61 = vrot.slane %v261_v57, %v62_v13 }
  0x63   :  { %658 = vmatprep.subr.bf16.mxu0 %v1070_v63  ;;  %v270_v63 = vrot.slane %v261_v57, %v66_v15 }
  0x65   :  { %624 = vmatpush1.bf16.msra.mxu1 %v1077_v5 }
  0x66   :  { %659 = vmatpush1.bf16.msra.mxu0 %v1068_v0  ;;  %951 = vmatprep.subr.bf16.mxu1 %v1084_v10 }
  0x67   :  { %660 = vmatprep.subr.bf16.mxu0 %v1076_v3 }
  0x6a   :  { %661 = vmatpush1.bf16.msra.mxu0 %v1074_v4 }
  0x6b   :  { %662 = vmatprep.subr.bf16.mxu0 %v1080_v6 }
  0x6e   :  { %663 = vmatpush1.bf16.msra.mxu0 %v1078_v7 }
  0x6f   :  { %664 = vmatprep.subr.bf16.mxu0 %v1083_v8 }
  0x72   :  { %665 = vmatpush1.bf16.msra.mxu0 %v1081_v9 }
 0x100   :  { %v141_v18 = vpop.f32.mrb[0].mxu0 }
 0x101   :  { %v142_v19 = vadd.f32 %v141_v18, %v63_v16  ;;  %v143_v20 = vpop.f32.mrb[1].mxu0 }
 0x102   :  { %v144_v22 = vadd.f32 %v143_v20, %v67_v17  ;;  %v145_v23 = vpop.f32.mrb[2].mxu0 }
 0x103   :  { %v189_v25 = vmax.f32 %v142_v19, 0.0  ;;  %v146_v26 = vpop.f32.mrb[3].mxu0 }
 0x104   :  { %v190_v27 = vmax.f32 %v144_v22, 0.0 }
 0x105   :  { %v193_v32 = vpack.c.bf16 %v189_v25, %v189_v25 }
 0x106   :  { %v194_v29 = vpack.c.bf16 %v190_v27, %v190_v27 }
 0x108   :  { %v182_v34 = vpop.f32.mrb[4].mxu0  ;;  %625 = vmatprep.mubr.bf16.mxu1 %v194_v29 }
 0x109   :  { %v183_v35 = vadd.f32 %v182_v34, %v71_v28  ;;  %v184_v36 = vpop.f32.mrb[5].mxu0  ;;  %626 = vmatmul.mubr.bf16.vlgmr.msra.gmra.mrb[0].mxu1 %v193_v32 }
 0x10a   :  { %v185_v37 = vadd.f32 %v184_v36, %v75_v30  ;;  %v186_v38 = vpop.f32.mrb[6].mxu0  ;;  %952 = vmatpush3.bf16.msra.mxu1 %v1085_v31 }
 0x10b   :  { %v191_v40 = vmax.f32 %v183_v35, 0.0  ;;  %v187_v41 = vpop.f32.mrb[7].mxu0  ;;  %953 = vmatprep.subr.bf16.mxu1 %v1086_v33 }
 0x10c   :  { %v192_v43 = vmax.f32 %v185_v37, 0.0 }
 0x10d   :  { %v195_v46 = vpack.c.bf16 %v191_v40, %v191_v40 }
 0x10e   :  { %v196_v44 = vpack.c.bf16 %v192_v43, %v192_v43  ;;  %954 = vmatpush3.bf16.msra.mxu1 %v1087_v39 }
 0x10f   :  { %955 = vmatprep.subr.bf16.mxu1 %v1088_v42 }
 0x110   :  { %666 = vmatprep.mubr.bf16.mxu0 %v196_v44 }
 0x111   :  { %667 = vmatmul.mubr.bf16.vlgmr.msra.gmra.mrb[8].mxu0 %v195_v46 }
 0x112   :  { %956 = vmatpush3.bf16.msra.mxu1 %v1089_v45 }
 0x113   :  { %957 = vmatprep.subr.bf16.mxu1 %v1090_v47 }
 0x116   :  { %958 = vmatpush3.bf16.msra.mxu1 %v1091_v48 }
 0x117   :  { %959 = vmatprep.subr.bf16.mxu1 %v1092_v49 }
 0x11a   :  { %960 = vmatpush3.bf16.msra.mxu1 %v1093_v50 }
 0x11b   :  { %961 = vmatprep.subr.bf16.mxu1 %v1094_v51 }
 0x11e   :  { %962 = vmatpush3.bf16.msra.mxu1 %v1095_v52 }
 0x11f   :  { %963 = vmatprep.subr.bf16.mxu1 %v1096_v53 }
 0x122   :  { %964 = vmatpush3.bf16.msra.mxu1 %v1097_v54 }
 0x123   :  { %965 = vmatprep.subr.bf16.mxu1 %v1098_v55 }
 0x126   :  { %966 = vmatpush3.bf16.msra.mxu1 %v1099_v56 }
 0x1dc   :  { %v627_v58 = vpop.f32.mrb[0].mxu1 }
 0x1dd   :  { %v629_v59 = vpop.f32.mrb[1].mxu1  ;;  %v628_v0 = vadd.f32 %v627_v58, %v266_v61 }
 0x1de   :  { %v631_v60 = vpop.f32.mrb[2].mxu1  ;;  %v630_v1 = vadd.f32 %v629_v59, %v270_v63 }
 0x1df   :  { %v632_v62 = vpop.f32.mrb[3].mxu1 }
 0x1e4   :  { %v668_v2 = vpop.f32.mrb[8].mxu0 }
 0x1e5   :  { %v669_v3 = vadd.f32 %v668_v2, %v628_v0  ;;  %v670_v4 = vpop.f32.mrb[9].mxu0 }
 0x1e6   :  { %v671_v5 = vadd.f32 %v670_v4, %v630_v1  ;;  %v672_v6 = vpop.f32.mrb[10].mxu0 }
 0x1e7   :  { %v675_v7 = vmax.f32 %v669_v3, 0.0  ;;  %v673_v8 = vpop.f32.mrb[11].mxu0 }
 0x1e8   :  { %v676_v9 = vmax.f32 %v671_v5, 0.0 }
 0x1e9   :  { %v677_v11 = vpack.c.bf16 %v675_v7, %v675_v7 }
 0x1ea   :  { %v678_v10 = vpack.c.bf16 %v676_v9, %v676_v9 }
 0x1ec   :  { %846 = vmatprep.mubr.bf16.mxu1 %v678_v10 }
 0x1ed   :  { %847 = vmatmul.mubr.bf16.vlgmr.msra.gmra.mrb[4].mxu1 %v677_v11 }
 0x2c0   :  { %v967_v14 = vpop.f32.mrb[4].mxu1 }
 0x2c1   :  { %v968_v13 = vpop.f32.mrb[5].mxu1 }
 0x2c2   :  { %v969_v15 = vadd.f32 %v968_v13, %v967_v14  ;;  %v970_v16 = vpop.f32.mrb[6].mxu1 }
 0x2c3   :  { %v971_v17 = vpop.f32.mrb[7].mxu1 }
 0x2c4   :  { %v849_v18 = vadd.f32 %v969_v15, %v934_v12 }
 0x2c6   :  { %1100 = vtanh.f32 %v849_v18 }
 0x2d0   :  { %v1101_v19 = vpop.eup %1100 }
 0x2d1   :  { %855 = vst [vmem:[%s1269_s7] sm:$0xff] %v1101_v19 }
 0x2d2   :  { %860 = vsyncpa [#allocation3], 1 }
 0x2d3   :  { %861 = vsyncpa [#allocation5], 1 }

</bundles_post_ra>
